<compile_context>
chip_gen: v7x
topology: tpu7x:2x2x1
jax: 0.10.0
libtpu: 0.0.40
codegen_flags: <defaults>
</compile_context>

<pallas_src>
import functools
import math

import jax
import jax.numpy as jnp
import numpy as np
from jax import lax
from jax.experimental import pallas as pl
from jax.experimental.pallas import tpu as pltpu

EPS = 1e-5      # nn.LayerNorm default eps
LANE = 128


def _round_up(n, m):
    return ((n + m - 1) // m) * m


def _gelu_exact(x):
    # PyTorch nn.GELU default (erf form).
    return 0.5 * x * (1.0 + lax.erf(x * (1.0 / math.sqrt(2.0))))


def _layernorm_true_d(x, gamma, beta, d_true):
    # Padded embed columns of x are exactly zero, so plain sums over the padded
    # lane dim give the statistics of the true (unpadded) D columns.
    s = jnp.sum(x, axis=-1, keepdims=True)
    ss = jnp.sum(x * x, axis=-1, keepdims=True)
    mu = s * (1.0 / d_true)
    var = ss * (1.0 / d_true) - mu * mu
    return (x - mu) * lax.rsqrt(var + EPS) * gamma + beta


def mixer_kernel(x_ref,
                 g1_ref, be1_ref,
                 wt1t_ref, bt1_ref, wt2t_ref, bt2_ref,
                 g2_ref, be2_ref,
                 wc1_ref, bc1_ref, wc2_ref, bc2_ref,
                 o_ref, *, d_true):
    bb, s, dp = x_ref.shape
    hp = wt1t_ref.shape[0]
    bf16, f32 = jnp.bfloat16, jnp.float32

    x = x_ref[...]                                              # (BB,S,Dp) f32

    # Lane mask of the real embed columns: padded lanes must stay zero so that
    # the true-D LayerNorm statistics (and the residual stream) remain exact.
    dmask = (lax.broadcasted_iota(jnp.int32, (1, dp), 1) < d_true).astype(f32)

    # ---------------- token mixing (mix over patches S) ----------------
    y = _layernorm_true_d(x, g1_ref[...], be1_ref[...], d_true)       # (BB,S,Dp)

    # h[b,h,d] = sum_s wt1[s,h] * y[b,s,d]   (wt1t = wt1^T, shape (Hp,S))
    wt1b = jnp.broadcast_to(wt1t_ref[...], (bb, hp, s))               # bf16
    h = jnp.einsum('bhs,bsd->bhd', wt1b, y.astype(bf16),
                   preferred_element_type=f32)                        # (BB,Hp,Dp)
    h = _gelu_exact(h + bt1_ref[...])                                 # bt1: (Hp,1)

    # tok[b,s,d] = sum_h wt2[h,s] * h[b,h,d]   (wt2t = wt2^T, shape (S,Hp))
    wt2b = jnp.broadcast_to(wt2t_ref[...], (bb, s, hp))               # bf16
    tok = jnp.einsum('bsh,bhd->bsd', wt2b, h.astype(bf16),
                     preferred_element_type=f32)                      # (BB,S,Dp)
    tok = (tok + bt2_ref[...]) * dmask                                # bt2: (S,1)

    x = x + tok                                                       # residual

    # ---------------- channel mixing (mix over embed D) ----------------
    y2 = _layernorm_true_d(x, g2_ref[...], be2_ref[...], d_true)      # (BB,S,Dp)
    y2f = y2.reshape(bb * s, dp)                                      # free reshape
    h2 = jnp.dot(y2f.astype(bf16), wc1_ref[...],
                 preferred_element_type=f32) + bc1_ref[...]           # (BB*S,Hp)
    h2 = _gelu_exact(h2)
    ch = jnp.dot(h2.astype(bf16), wc2_ref[...],
                 preferred_element_type=f32) + bc2_ref[...]           # (BB*S,Dp)

    o_ref[...] = (x + ch.reshape(bb, s, dp)).astype(o_ref.dtype)


def mixer_block(x, params, *, batch_block=None):
    B, S, D = x.shape
    H = params["wt1"].shape[1]
    Dp = _round_up(D, LANE)
    Hp = _round_up(H, LANE)
    f32, bf16 = jnp.float32, jnp.bfloat16

    if batch_block is None:
        batch_block = B          # single grid step on v5e/v6e; use B//2 on v7x
    assert B % batch_block == 0
    nb = B // batch_block

    def pad_to(a, shape):
        return jnp.pad(a, [(0, t - s) for s, t in zip(a.shape, shape)])

    xp = pad_to(x.astype(f32), (B, S, Dp))

    plist = [
        pad_to(params["ln1_g"].astype(f32), (1, Dp)),                 # (1,Dp)
        pad_to(params["ln1_b"].astype(f32), (1, Dp)),                 # (1,Dp)
        pad_to(params["wt1"].T, (Hp, S)).astype(bf16),                # (Hp,S)
        pad_to(params["bt1"].astype(f32).reshape(H, 1), (Hp, 1)),     # (Hp,1)
        pad_to(params["wt2"].T, (S, Hp)).astype(bf16),                # (S,Hp)
        params["bt2"].astype(f32).reshape(S, 1),                      # (S,1)
        pad_to(params["ln2_g"].astype(f32), (1, Dp)),                 # (1,Dp)
        pad_to(params["ln2_b"].astype(f32), (1, Dp)),                 # (1,Dp)
        pad_to(params["wc1"], (Dp, Hp)).astype(bf16),                 # (Dp,Hp)
        pad_to(params["bc1"].astype(f32), (1, Hp)),                   # (1,Hp)
        pad_to(params["wc2"], (Hp, Dp)).astype(bf16),                 # (Hp,Dp)
        pad_to(params["bc2"].astype(f32), (1, Dp)),                   # (1,Dp)
    ]

    def const_spec(p):
        # Whole weight / LN param resident as a single block (constant index
        # map, never re-fetched).  At real Mixer sizes on v7x, tile Hp instead.
        return pl.BlockSpec(p.shape, lambda b, _n=p.ndim: (0,) * _n)

    out = pl.pallas_call(
        functools.partial(mixer_kernel, d_true=D),
        out_shape=jax.ShapeDtypeStruct((B, S, Dp), f32),
        grid_spec=pltpu.PrefetchScalarGridSpec(
            num_scalar_prefetch=0,
            grid=(nb,),
            in_specs=[pl.BlockSpec((batch_block, S, Dp), lambda b: (b, 0, 0))]
                     + [const_spec(p) for p in plist],
            out_specs=pl.BlockSpec((batch_block, S, Dp), lambda b: (b, 0, 0)),
        ),
        compiler_params=pltpu.CompilerParams(
            dimension_semantics=("parallel",)),
    )(xp, *plist)

    return out[..., :D].astype(x.dtype)


# Pure-JAX float32 reference (faithful to the PyTorch module) for correctness.
def mixer_block_ref(x, p):
    def ln(v, g, b):
        mu = jnp.mean(v, axis=-1, keepdims=True)
        var = jnp.mean(jnp.square(v - mu), axis=-1, keepdims=True)
        return (v - mu) * lax.rsqrt(var + EPS) * g + b

    y = ln(x, p["ln1_g"], p["ln1_b"])
    yt = jnp.swapaxes(y, 1, 2)
    h = _gelu_exact(yt @ p["wt1"] + p["bt1"])
    tok = h @ p["wt2"] + p["bt2"]
    x = x + jnp.swapaxes(tok, 1, 2)
    y2 = ln(x, p["ln2_g"], p["ln2_b"])
    h2 = _gelu_exact(y2 @ p["wc1"] + p["bc1"])
    ch = h2 @ p["wc2"] + p["bc2"]
    return x + ch


def init_params(key, S, D, H):
    ks = jax.random.split(key, 8)
    scale = 0.02
    return {
        "ln1_g": jnp.ones((1, D), jnp.float32),
        "ln1_b": jnp.zeros((1, D), jnp.float32),
        "wt1": scale * jax.random.normal(ks[0], (S, H), jnp.float32),
        "bt1": scale * jax.random.normal(ks[1], (1, H), jnp.float32),
        "wt2": scale * jax.random.normal(ks[2], (H, S), jnp.float32),
        "bt2": scale * jax.random.normal(ks[3], (1, S), jnp.float32),
        "ln2_g": jnp.ones((1, D), jnp.float32),
        "ln2_b": jnp.zeros((1, D), jnp.float32),
        "wc1": scale * jax.random.normal(ks[4], (D, H), jnp.float32),
        "bc1": scale * jax.random.normal(ks[5], (1, H), jnp.float32),
        "wc2": scale * jax.random.normal(ks[6], (H, D), jnp.float32),
        "bc2": scale * jax.random.normal(ks[7], (1, D), jnp.float32),
    }


if __name__ == "__main__":
    # Module config: image_size=16, patch_size=4 -> num_patches S = 16
    B, image_size, patch_size = 2, 16, 4
    embed_dim, hidden_dim = 32, 64
    S = image_size * image_size // patch_size ** 2   # 16
    D, H = embed_dim, hidden_dim

    key = jax.random.PRNGKey(0)
    kx, kp = jax.random.split(key)
    x = jax.random.normal(kx, (B, S, D), jnp.float32)
    params = init_params(kp, S, D, H)

    out = mixer_block(x, params)
    out = jax.block_until_ready(out)

    ref = mixer_block_ref(x, params)
    # Kernel feeds the MXU bf16 operands (f32 accumulation); tolerance reflects
    # bf16 matmul rounding vs. the pure-f32 reference.
    np.testing.assert_allclose(np.asarray(out), np.asarray(ref),
                               rtol=2e-2, atol=2e-2)
    print("KERNEL_OK")
</pallas_src>

<mosaic_0001>
module attributes {stable_mosaic.version = 11 : i64} {
  func.func @mixer_kernel(%arg0: i32, %arg1: memref<2x16x128xf32, #tpu.memory_space<vmem>>, %arg2: memref<1x128xf32, #tpu.memory_space<vmem>>, %arg3: memref<1x128xf32, #tpu.memory_space<vmem>>, %arg4: memref<128x16xbf16, #tpu.memory_space<vmem>>, %arg5: memref<128x1xf32, #tpu.memory_space<vmem>>, %arg6: memref<16x128xbf16, #tpu.memory_space<vmem>>, %arg7: memref<16x1xf32, #tpu.memory_space<vmem>>, %arg8: memref<1x128xf32, #tpu.memory_space<vmem>>, %arg9: memref<1x128xf32, #tpu.memory_space<vmem>>, %arg10: memref<128x128xbf16, #tpu.memory_space<vmem>>, %arg11: memref<1x128xf32, #tpu.memory_space<vmem>>, %arg12: memref<128x128xbf16, #tpu.memory_space<vmem>>, %arg13: memref<1x128xf32, #tpu.memory_space<vmem>>, %arg14: memref<2x16x128xf32, #tpu.memory_space<vmem>>) attributes {dimension_semantics = [#tpu.dimension_semantics<parallel>], iteration_bounds = array<i64: 1>, scalar_prefetch = 0 : i64, scratch_operands = 0 : i64, tpu.core_type = #tpu.core_type<tc>, window_params = [{transform_indices = @transform_0, window_bounds = array<i64: 2, 16, 128>}, {pipeline_mode = #tpu.pipeline_mode<synchronous>, transform_indices = @transform_1, window_bounds = array<i64: 1, 128>}, {pipeline_mode = #tpu.pipeline_mode<synchronous>, transform_indices = @transform_2, window_bounds = array<i64: 1, 128>}, {pipeline_mode = #tpu.pipeline_mode<synchronous>, transform_indices = @transform_3, window_bounds = array<i64: 128, 16>}, {pipeline_mode = #tpu.pipeline_mode<synchronous>, transform_indices = @transform_4, window_bounds = array<i64: 128, 1>}, {pipeline_mode = #tpu.pipeline_mode<synchronous>, transform_indices = @transform_5, window_bounds = array<i64: 16, 128>}, {pipeline_mode = #tpu.pipeline_mode<synchronous>, transform_indices = @transform_6, window_bounds = array<i64: 16, 1>}, {pipeline_mode = #tpu.pipeline_mode<synchronous>, transform_indices = @transform_7, window_bounds = array<i64: 1, 128>}, {pipeline_mode = #tpu.pipeline_mode<synchronous>, transform_indices = @transform_8, window_bounds = array<i64: 1, 128>}, {pipeline_mode = #tpu.pipeline_mode<synchronous>, transform_indices = @transform_9, window_bounds = array<i64: 128, 128>}, {pipeline_mode = #tpu.pipeline_mode<synchronous>, transform_indices = @transform_10, window_bounds = array<i64: 1, 128>}, {pipeline_mode = #tpu.pipeline_mode<synchronous>, transform_indices = @transform_11, window_bounds = array<i64: 128, 128>}, {pipeline_mode = #tpu.pipeline_mode<synchronous>, transform_indices = @transform_12, window_bounds = array<i64: 1, 128>}, {transform_indices = @transform_13, window_bounds = array<i64: 2, 16, 128>}]} {
    %c0 = arith.constant 0 : index
    %c0_0 = arith.constant 0 : index
    %c0_1 = arith.constant 0 : index
    %0 = vector.load %arg1[%c0, %c0_0, %c0_1] : memref<2x16x128xf32, #tpu.memory_space<vmem>>, vector<2x16x128xf32>
    %1 = tpu.iota {dimensions = array<i32: 1>} : vector<1x128xi32>
    %c32_i32 = arith.constant 32 : i32
    %2 = vector.broadcast %c32_i32 : i32 to vector<1x128xi32>
    %3 = arith.cmpi slt, %1, %2 : vector<1x128xi32>
    %4 = arith.extui %3 : vector<1x128xi1> to vector<1x128xi32>
    %5 = arith.sitofp %4 : vector<1x128xi32> to vector<1x128xf32>
    %c0_2 = arith.constant 0 : index
    %c0_3 = arith.constant 0 : index
    %6 = vector.load %arg2[%c0_2, %c0_3] : memref<1x128xf32, #tpu.memory_space<vmem>>, vector<1x128xf32>
    %c0_4 = arith.constant 0 : index
    %c0_5 = arith.constant 0 : index
    %7 = vector.load %arg3[%c0_4, %c0_5] : memref<1x128xf32, #tpu.memory_space<vmem>>, vector<1x128xf32>
    %cst = arith.constant dense<0.000000e+00> : vector<2x16xf32>
    %8 = vector.multi_reduction <add>, %0, %cst [2] : vector<2x16x128xf32> to vector<2x16xf32>
    %9 = vector.shape_cast %8 : vector<2x16xf32> to vector<2x16x1xf32>
    %10 = arith.mulf %0, %0 : vector<2x16x128xf32>
    %cst_6 = arith.constant dense<0.000000e+00> : vector<2x16xf32>
    %11 = vector.multi_reduction <add>, %10, %cst_6 [2] : vector<2x16x128xf32> to vector<2x16xf32>
    %12 = vector.shape_cast %11 : vector<2x16xf32> to vector<2x16x1xf32>
    %cst_7 = arith.constant 3.125000e-02 : f32
    %13 = vector.broadcast %cst_7 : f32 to vector<2x16x1xf32>
    %14 = arith.mulf %9, %13 : vector<2x16x1xf32>
    %cst_8 = arith.constant 3.125000e-02 : f32
    %15 = vector.broadcast %cst_8 : f32 to vector<2x16x1xf32>
    %16 = arith.mulf %12, %15 : vector<2x16x1xf32>
    %17 = arith.mulf %14, %14 : vector<2x16x1xf32>
    %18 = arith.subf %16, %17 : vector<2x16x1xf32>
    %19 = vector.broadcast %14 : vector<2x16x1xf32> to vector<2x16x128xf32>
    %20 = arith.subf %0, %19 : vector<2x16x128xf32>
    %cst_9 = arith.constant 9.99999974E-6 : f32
    %21 = vector.broadcast %cst_9 : f32 to vector<2x16x1xf32>
    %22 = arith.addf %18, %21 : vector<2x16x1xf32>
    %23 = math.rsqrt %22 : vector<2x16x1xf32>
    %24 = vector.broadcast %23 : vector<2x16x1xf32> to vector<2x16x128xf32>
    %25 = arith.mulf %20, %24 : vector<2x16x128xf32>
    %26 = vector.shape_cast %6 : vector<1x128xf32> to vector<1x1x128xf32>
    %27 = vector.broadcast %26 : vector<1x1x128xf32> to vector<2x16x128xf32>
    %28 = arith.mulf %25, %27 : vector<2x16x128xf32>
    %29 = vector.shape_cast %7 : vector<1x128xf32> to vector<1x1x128xf32>
    %30 = vector.broadcast %29 : vector<1x1x128xf32> to vector<2x16x128xf32>
    %31 = arith.addf %28, %30 : vector<2x16x128xf32>
    %c0_10 = arith.constant 0 : index
    %c0_11 = arith.constant 0 : index
    %32 = vector.load %arg4[%c0_10, %c0_11] : memref<128x16xbf16, #tpu.memory_space<vmem>>, vector<128x16xbf16>
    %33 = vector.shape_cast %32 : vector<128x16xbf16> to vector<1x128x16xbf16>
    %34 = vector.broadcast %33 : vector<1x128x16xbf16> to vector<2x128x16xbf16>
    %35 = arith.truncf %31 : vector<2x16x128xf32> to vector<2x16x128xbf16>
    "tpu.trace_start"() <{level = 10 : i32, message = "bhs,bsd->bhd"}> : () -> ()
    %cst_12 = arith.constant dense<0.000000e+00> : vector<2x128x128xf32>
    %36 = tpu.matmul %34, %35, %cst_12 {dimension_numbers = #tpu.dot_dimension_numbers<[2], [1], [1], [2], [0, 0, 0, 1, 1, 2], [0], [0]>} : vector<2x128x16xbf16>, vector<2x16x128xbf16>, vector<2x128x128xf32> -> vector<2x128x128xf32>
    "tpu.trace_stop"() : () -> ()
    %c0_13 = arith.constant 0 : index
    %c0_14 = arith.constant 0 : index
    %37 = vector.load %arg5[%c0_13, %c0_14] : memref<128x1xf32, #tpu.memory_space<vmem>>, vector<128x1xf32>
    %38 = vector.shape_cast %37 : vector<128x1xf32> to vector<1x128x1xf32>
    %39 = vector.broadcast %38 : vector<1x128x1xf32> to vector<2x128x128xf32>
    %40 = arith.addf %36, %39 : vector<2x128x128xf32>
    %cst_15 = arith.constant 5.000000e-01 : f32
    %41 = vector.broadcast %cst_15 : f32 to vector<2x128x128xf32>
    %42 = arith.mulf %41, %40 : vector<2x128x128xf32>
    %cst_16 = arith.constant 0.707106769 : f32
    %43 = vector.broadcast %cst_16 : f32 to vector<2x128x128xf32>
    %44 = arith.mulf %40, %43 : vector<2x128x128xf32>
    %45 = math.erf %44 : vector<2x128x128xf32>
    %cst_17 = arith.constant 1.000000e+00 : f32
    %46 = vector.broadcast %cst_17 : f32 to vector<2x128x128xf32>
    %47 = arith.addf %46, %45 : vector<2x128x128xf32>
    %48 = arith.mulf %42, %47 : vector<2x128x128xf32>
    %c0_18 = arith.constant 0 : index
    %c0_19 = arith.constant 0 : index
    %49 = vector.load %arg6[%c0_18, %c0_19] : memref<16x128xbf16, #tpu.memory_space<vmem>>, vector<16x128xbf16>
    %50 = vector.shape_cast %49 : vector<16x128xbf16> to vector<1x16x128xbf16>
    %51 = vector.broadcast %50 : vector<1x16x128xbf16> to vector<2x16x128xbf16>
    %52 = arith.truncf %48 : vector<2x128x128xf32> to vector<2x128x128xbf16>
    "tpu.trace_start"() <{level = 10 : i32, message = "bsh,bhd->bsd"}> : () -> ()
    %cst_20 = arith.constant dense<0.000000e+00> : vector<2x16x128xf32>
    %53 = tpu.matmul %51, %52, %cst_20 {dimension_numbers = #tpu.dot_dimension_numbers<[2], [1], [1], [2], [0, 0, 0, 1, 1, 2], [0], [0]>} : vector<2x16x128xbf16>, vector<2x128x128xbf16>, vector<2x16x128xf32> -> vector<2x16x128xf32>
    "tpu.trace_stop"() : () -> ()
    %c0_21 = arith.constant 0 : index
    %c0_22 = arith.constant 0 : index
    %54 = vector.load %arg7[%c0_21, %c0_22] : memref<16x1xf32, #tpu.memory_space<vmem>>, vector<16x1xf32>
    %55 = vector.shape_cast %54 : vector<16x1xf32> to vector<1x16x1xf32>
    %56 = vector.broadcast %55 : vector<1x16x1xf32> to vector<2x16x128xf32>
    %57 = arith.addf %53, %56 : vector<2x16x128xf32>
    %58 = vector.shape_cast %5 : vector<1x128xf32> to vector<1x1x128xf32>
    %59 = vector.broadcast %58 : vector<1x1x128xf32> to vector<2x16x128xf32>
    %60 = arith.mulf %57, %59 : vector<2x16x128xf32>
    %61 = arith.addf %0, %60 : vector<2x16x128xf32>
    %c0_23 = arith.constant 0 : index
    %c0_24 = arith.constant 0 : index
    %62 = vector.load %arg8[%c0_23, %c0_24] : memref<1x128xf32, #tpu.memory_space<vmem>>, vector<1x128xf32>
    %c0_25 = arith.constant 0 : index
    %c0_26 = arith.constant 0 : index
    %63 = vector.load %arg9[%c0_25, %c0_26] : memref<1x128xf32, #tpu.memory_space<vmem>>, vector<1x128xf32>
    %cst_27 = arith.constant dense<0.000000e+00> : vector<2x16xf32>
    %64 = vector.multi_reduction <add>, %61, %cst_27 [2] : vector<2x16x128xf32> to vector<2x16xf32>
    %65 = vector.shape_cast %64 : vector<2x16xf32> to vector<2x16x1xf32>
    %66 = arith.mulf %61, %61 : vector<2x16x128xf32>
    %cst_28 = arith.constant dense<0.000000e+00> : vector<2x16xf32>
    %67 = vector.multi_reduction <add>, %66, %cst_28 [2] : vector<2x16x128xf32> to vector<2x16xf32>
    %68 = vector.shape_cast %67 : vector<2x16xf32> to vector<2x16x1xf32>
    %cst_29 = arith.constant 3.125000e-02 : f32
    %69 = vector.broadcast %cst_29 : f32 to vector<2x16x1xf32>
    %70 = arith.mulf %65, %69 : vector<2x16x1xf32>
    %cst_30 = arith.constant 3.125000e-02 : f32
    %71 = vector.broadcast %cst_30 : f32 to vector<2x16x1xf32>
    %72 = arith.mulf %68, %71 : vector<2x16x1xf32>
    %73 = arith.mulf %70, %70 : vector<2x16x1xf32>
    %74 = arith.subf %72, %73 : vector<2x16x1xf32>
    %75 = vector.broadcast %70 : vector<2x16x1xf32> to vector<2x16x128xf32>
    %76 = arith.subf %61, %75 : vector<2x16x128xf32>
    %cst_31 = arith.constant 9.99999974E-6 : f32
    %77 = vector.broadcast %cst_31 : f32 to vector<2x16x1xf32>
    %78 = arith.addf %74, %77 : vector<2x16x1xf32>
    %79 = math.rsqrt %78 : vector<2x16x1xf32>
    %80 = vector.broadcast %79 : vector<2x16x1xf32> to vector<2x16x128xf32>
    %81 = arith.mulf %76, %80 : vector<2x16x128xf32>
    %82 = vector.shape_cast %62 : vector<1x128xf32> to vector<1x1x128xf32>
    %83 = vector.broadcast %82 : vector<1x1x128xf32> to vector<2x16x128xf32>
    %84 = arith.mulf %81, %83 : vector<2x16x128xf32>
    %85 = vector.shape_cast %63 : vector<1x128xf32> to vector<1x1x128xf32>
    %86 = vector.broadcast %85 : vector<1x1x128xf32> to vector<2x16x128xf32>
    %87 = arith.addf %84, %86 : vector<2x16x128xf32>
    %88 = vector.shape_cast %87 : vector<2x16x128xf32> to vector<32x128xf32>
    %89 = arith.truncf %88 : vector<32x128xf32> to vector<32x128xbf16>
    %c0_32 = arith.constant 0 : index
    %c0_33 = arith.constant 0 : index
    %90 = vector.load %arg10[%c0_32, %c0_33] : memref<128x128xbf16, #tpu.memory_space<vmem>>, vector<128x128xbf16>
    %cst_34 = arith.constant dense<0.000000e+00> : vector<32x128xf32>
    %91 = tpu.matmul %89, %90, %cst_34 {dimension_numbers = #tpu.dot_dimension_numbers<[1], [0], [0], [1], [0, 0, 1, 1], [], []>} : vector<32x128xbf16>, vector<128x128xbf16>, vector<32x128xf32> -> vector<32x128xf32>
    %c0_35 = arith.constant 0 : index
    %c0_36 = arith.constant 0 : index
    %92 = vector.load %arg11[%c0_35, %c0_36] : memref<1x128xf32, #tpu.memory_space<vmem>>, vector<1x128xf32>
    %93 = vector.broadcast %92 : vector<1x128xf32> to vector<32x128xf32>
    %94 = arith.addf %91, %93 : vector<32x128xf32>
    %cst_37 = arith.constant 5.000000e-01 : f32
    %95 = vector.broadcast %cst_37 : f32 to vector<32x128xf32>
    %96 = arith.mulf %95, %94 : vector<32x128xf32>
    %cst_38 = arith.constant 0.707106769 : f32
    %97 = vector.broadcast %cst_38 : f32 to vector<32x128xf32>
    %98 = arith.mulf %94, %97 : vector<32x128xf32>
    %99 = math.erf %98 : vector<32x128xf32>
    %cst_39 = arith.constant 1.000000e+00 : f32
    %100 = vector.broadcast %cst_39 : f32 to vector<32x128xf32>
    %101 = arith.addf %100, %99 : vector<32x128xf32>
    %102 = arith.mulf %96, %101 : vector<32x128xf32>
    %103 = arith.truncf %102 : vector<32x128xf32> to vector<32x128xbf16>
    %c0_40 = arith.constant 0 : index
    %c0_41 = arith.constant 0 : index
    %104 = vector.load %arg12[%c0_40, %c0_41] : memref<128x128xbf16, #tpu.memory_space<vmem>>, vector<128x128xbf16>
    %cst_42 = arith.constant dense<0.000000e+00> : vector<32x128xf32>
    %105 = tpu.matmul %103, %104, %cst_42 {dimension_numbers = #tpu.dot_dimension_numbers<[1], [0], [0], [1], [0, 0, 1, 1], [], []>} : vector<32x128xbf16>, vector<128x128xbf16>, vector<32x128xf32> -> vector<32x128xf32>
    %c0_43 = arith.constant 0 : index
    %c0_44 = arith.constant 0 : index
    %106 = vector.load %arg13[%c0_43, %c0_44] : memref<1x128xf32, #tpu.memory_space<vmem>>, vector<1x128xf32>
    %107 = vector.broadcast %106 : vector<1x128xf32> to vector<32x128xf32>
    %108 = arith.addf %105, %107 : vector<32x128xf32>
    %109 = vector.shape_cast %108 : vector<32x128xf32> to vector<2x16x128xf32>
    %110 = arith.addf %61, %109 : vector<2x16x128xf32>
    %c0_45 = arith.constant 0 : index
    %c0_46 = arith.constant 0 : index
    %c0_47 = arith.constant 0 : index
    %111 = vector.load %arg14[%c0_45, %c0_46, %c0_47] : memref<2x16x128xf32, #tpu.memory_space<vmem>>, vector<2x16x128xf32>
    tpu.vector_store %arg14[%c0_45, %c0_46, %c0_47], %110 {strides = array<i32>} : memref<2x16x128xf32, #tpu.memory_space<vmem>>, vector<2x16x128xf32>,
    return
  }
  func.func @transform_0(%arg0: i32) -> (i32, i32, i32) {
    %c0_i32 = arith.constant 0 : i32
    %c0_i32_0 = arith.constant 0 : i32
    %c0_i32_1 = arith.constant 0 : i32
    return %arg0, %c0_i32, %c0_i32_0 : i32, i32, i32
  }
  func.func @transform_1(%arg0: i32) -> (i32, i32) {
    %c0_i32 = arith.constant 0 : i32
    %c0_i32_0 = arith.constant 0 : i32
    %c0_i32_1 = arith.constant 0 : i32
    return %c0_i32, %c0_i32_0 : i32, i32
  }
  func.func @transform_2(%arg0: i32) -> (i32, i32) {
    %c0_i32 = arith.constant 0 : i32
    %c0_i32_0 = arith.constant 0 : i32
    %c0_i32_1 = arith.constant 0 : i32
    return %c0_i32, %c0_i32_0 : i32, i32
  }
  func.func @transform_3(%arg0: i32) -> (i32, i32) {
    %c0_i32 = arith.constant 0 : i32
    %c0_i32_0 = arith.constant 0 : i32
    %c0_i32_1 = arith.constant 0 : i32
    return %c0_i32, %c0_i32_0 : i32, i32
  }
  func.func @transform_4(%arg0: i32) -> (i32, i32) {
    %c0_i32 = arith.constant 0 : i32
    %c0_i32_0 = arith.constant 0 : i32
    %c0_i32_1 = arith.constant 0 : i32
    return %c0_i32, %c0_i32_0 : i32, i32
  }
  func.func @transform_5(%arg0: i32) -> (i32, i32) {
    %c0_i32 = arith.constant 0 : i32
    %c0_i32_0 = arith.constant 0 : i32
    %c0_i32_1 = arith.constant 0 : i32
    return %c0_i32, %c0_i32_0 : i32, i32
  }
  func.func @transform_6(%arg0: i32) -> (i32, i32) {
    %c0_i32 = arith.constant 0 : i32
    %c0_i32_0 = arith.constant 0 : i32
    %c0_i32_1 = arith.constant 0 : i32
    return %c0_i32, %c0_i32_0 : i32, i32
  }
  func.func @transform_7(%arg0: i32) -> (i32, i32) {
    %c0_i32 = arith.constant 0 : i32
    %c0_i32_0 = arith.constant 0 : i32
    %c0_i32_1 = arith.constant 0 : i32
    return %c0_i32, %c0_i32_0 : i32, i32
  }
  func.func @transform_8(%arg0: i32) -> (i32, i32) {
    %c0_i32 = arith.constant 0 : i32
    %c0_i32_0 = arith.constant 0 : i32
    %c0_i32_1 = arith.constant 0 : i32
    return %c0_i32, %c0_i32_0 : i32, i32
  }
  func.func @transform_9(%arg0: i32) -> (i32, i32) {
    %c0_i32 = arith.constant 0 : i32
    %c0_i32_0 = arith.constant 0 : i32
    %c0_i32_1 = arith.constant 0 : i32
    return %c0_i32, %c0_i32_0 : i32, i32
  }
  func.func @transform_10(%arg0: i32) -> (i32, i32) {
    %c0_i32 = arith.constant 0 : i32
    %c0_i32_0 = arith.constant 0 : i32
    %c0_i32_1 = arith.constant 0 : i32
    return %c0_i32, %c0_i32_0 : i32, i32
  }
  func.func @transform_11(%arg0: i32) -> (i32, i32) {
    %c0_i32 = arith.constant 0 : i32
    %c0_i32_0 = arith.constant 0 : i32
    %c0_i32_1 = arith.constant 0 : i32
    return %c0_i32, %c0_i32_0 : i32, i32
  }
  func.func @transform_12(%arg0: i32) -> (i32, i32) {
    %c0_i32 = arith.constant 0 : i32
    %c0_i32_0 = arith.constant 0 : i32
    %c0_i32_1 = arith.constant 0 : i32
    return %c0_i32, %c0_i32_0 : i32, i32
  }
  func.func @transform_13(%arg0: i32) -> (i32, i32, i32) {
    %c0_i32 = arith.constant 0 : i32
    %c0_i32_0 = arith.constant 0 : i32
    %c0_i32_1 = arith.constant 0 : i32
    return %arg0, %c0_i32, %c0_i32_0 : i32, i32, i32
  }
}

</mosaic_0001>

<bundles_post_ra>
// kernel: tpu_custom_call.1
= control target key start
LH: loop header
LB: loop body
LE: loop exit
PB: predicated region body
PF: predicated region fallthrough
CT: control target
= control target key end

     0   :  { %s2005_s0 = inlined_call_operand.vmem [shape: f32[2,16,128], index: 0, kind: input, shape index: {}]   ;;  %s2006_s1 = inlined_call_operand.vmem [shape: f32[1,128], index: 1, kind: input, shape index: {}]   ;;  %s2007_s2 = inlined_call_operand.vmem [shape: f32[1,128], index: 2, kind: input, shape index: {}]   ;;  %s2008_s3 = inlined_call_operand.vmem [shape: bf16[128,16], index: 3, kind: input, shape index: {}]   ;;  %s2009_s4 = inlined_call_operand.vmem [shape: f32[128,1], index: 4, kind: input, shape index: {}]   ;;  %s2010_s5 = inlined_call_operand.vmem [shape: bf16[16,128], index: 5, kind: input, shape index: {}]   ;;  %s2011_s6 = inlined_call_operand.vmem [shape: f32[16,1], index: 6, kind: input, shape index: {}]   ;;  %s2012_s7 = inlined_call_operand.vmem [shape: f32[1,128], index: 7, kind: input, shape index: {}]   ;;  %s2013_s8 = inlined_call_operand.vmem [shape: f32[1,128], index: 8, kind: input, shape index: {}]   ;;  %s2014_s9 = inlined_call_operand.vmem [shape: bf16[128,128], index: 9, kind: input, shape index: {}]   ;;  %s2015_s10 = inlined_call_operand.vmem [shape: f32[1,128], index: 10, kind: input, shape index: {}]   ;;  %s2016_s11 = inlined_call_operand.vmem [shape: bf16[128,128], index: 11, kind: input, shape index: {}]   ;;  %s2017_s12 = inlined_call_operand.vmem [shape: f32[1,128], index: 12, kind: input, shape index: {}]   ;;  %s2018_s13 = inlined_call_operand.hbm [shape: f32[2,16,128], index: 13, kind: output, shape index: {}]  }
   0x1   :  { %v1598_v0 = vld [vmem:[%s2005_s0 + $0x10] sm:$0xff]  ;;  %v1603_v1 = vld [vmem:[%s2005_s0] sm:$0xff]  ;;  %v1608_v2 = vld [vmem:[%s2005_s0 + $0x18] sm:$0xff] }
   0x2   :  { %61 = vadd.xlane.f32.xlu1 %v1598_v0  ;;  %57 = vadd.xlane.f32.xlu0 %v1603_v1  ;;  %v1615_v3 = vld [vmem:[%s2005_s0 + $0x8] sm:$0xff]  ;;  %v65_v5 = vmul.f32 %v1603_v1, %v1603_v1  ;;  %v68_v6 = vmul.f32 %v1608_v2, %v1608_v2  ;;  %v67_v7 = vmul.f32 %v1598_v0, %v1598_v0 }
   0x3   :  { %v66_v4 = vmul.f32 %v1615_v3, %v1615_v3 }
   0x6   :  { %63 = vadd.xlane.f32.xlu1 %v1608_v2  ;;  %59 = vadd.xlane.f32.xlu0 %v1615_v3 }
   0xa   :  { %71 = vadd.xlane.f32.xlu1 %v66_v4  ;;  %69 = vadd.xlane.f32.xlu0 %v65_v5 }
   0xe   :  { %75 = vadd.xlane.f32.xlu1 %v68_v6  ;;  %73 = vadd.xlane.f32.xlu0 %v67_v7 }
   0xf   :  { %18 = vsyncpa [#allocation3], 0  ;;  %v1378_v8 = vld [vmem:[%s2008_s3] sm:$0xff]   ;;  %vm283_vm0 = vcmask 130048   ;;  %v148_v9 = vld [vmem:[%s2009_s4 + $0x8] sm:$0xff]  ;;  %v1519_v10 = vmov 0  }
  0x10   :  { %1256 = vmatprep.mubr.msk.bf16.mxu0 %vm283_vm0, %v1378_v8  ;;  %1274 = vmatprep.mubr.msk.bf16.mxu1 %vm283_vm0, %v1378_v8  ;;  %v149_v11 = vld [vmem:[%s2009_s4 + $0x10] sm:$0xff]  ;;  %v147_v12 = vld [vmem:[%s2009_s4] sm:$0xff]  ;;  %v156_v13 = vld [vmem:[%s2009_s4 + $0x48] sm:$0xff]  ;;  %vm1521_vm1 = vmmov 0   ;;  %s1522_s14 = smov [#allocation2]  }
  0x11   :  { %1377 = vset.pattern.permute.xlu1 %v1519_v10  ;;  %1376 = vset.pattern.permute.xlu0 %v1519_v10  ;;  %v150_v14 = vld [vmem:[%s2009_s4 + $0x18] sm:$0xff]  ;;  %v151_v16 = vld [vmem:[%s2009_s4 + $0x20] sm:$0xff]  ;;  %v160_v17 = vld [vmem:[%s2009_s4 + $0x68] sm:$0xff]  ;;  %s1139_s15 = sshll.u32 %s1522_s14, 4  ;;  %s1140_s15 = int_to_ptr.vmem [resolvable:$true] %s1139_s15 }
  0x12   :  { %v158_v15 = vld [vmem:[%s2009_s4 + $0x58] sm:$0xff]  ;;  %v152_v18 = vld [vmem:[%s2009_s4 + $0x28] sm:$0xff]  ;;  %v153_v20 = vld [vmem:[%s2009_s4 + $0x30] sm:$0xff]  ;;  %p1500_p1 = scmp.lt.s32.totalorder %s1140_s15, %s1140_s15 }
  0x13   :  { %v162_v19 = vld [vmem:[%s2009_s4 + $0x78] sm:$0xff]  ;;  %v681_v21 = vld [vmem:[%s2011_s6 + $0x8] sm:$0xff]  ;;  %v155_v23 = vld [vmem:[%s2009_s4 + $0x40] sm:$0xff] }
  0x14   :  { %v154_v22 = vld [vmem:[%s2009_s4 + $0x38] sm:$0xff]  ;;  %v157_v24 = vld [vmem:[%s2009_s4 + $0x50] sm:$0xff]  ;;  %v159_v25 = vld [vmem:[%s2009_s4 + $0x60] sm:$0xff] }
  0x15   :  { %v161_v26 = vld [vmem:[%s2009_s4 + $0x70] sm:$0xff]  ;;  %v680_v27 = vld [vmem:[%s2011_s6] sm:$0xff] }
  0x16   :  { %v1151_v59 = vld [vmem:[%s2006_s1] ss:$0 sm:$0xff] }
  0x17   :  { %v1152_v62 = vld [vmem:[%s2007_s2] ss:$0 sm:$0xff] }
  0x1f   :  { %170 = vperm.xlu1 %1377, %v148_v9  }
  0x23   :  { %175 = vperm.xlu1 %1377, %v149_v11  }
  0x24   :  { %165 = vperm.xlu0 %1376, %v147_v12  }
  0x27   :  { %180 = vperm.xlu1 %1377, %v150_v14  }
  0x28   :  { %210 = vperm.xlu0 %1376, %v156_v13  }
  0x2b   :  { %185 = vperm.xlu1 %1377, %v151_v16   ;;  %v1379_v16 = vld [vmem:[%s2008_s3 + $0x8] sm:$0xff]  }
  0x2c   :  { %220 = vperm.xlu0 %1376, %v158_v15  }
  0x2f   :  { %190 = vperm.xlu1 %1377, %v152_v18   ;;  %v1381_v18 = vld [vmem:[%s2008_s3 + $0x18] sm:$0xff]  }
  0x30   :  { %230 = vperm.xlu0 %1376, %v160_v17  }
  0x33   :  { %195 = vperm.xlu1 %1377, %v153_v20   ;;  %v1383_v20 = vld [vmem:[%s2008_s3 + $0x28] sm:$0xff]  }
  0x34   :  { %240 = vperm.xlu0 %1376, %v162_v19   ;;  %v1382_v19 = vld [vmem:[%s2008_s3 + $0x20] sm:$0xff]  }
  0x37   :  { %200 = vperm.xlu1 %1377, %v154_v22   ;;  %v1385_v22 = vld [vmem:[%s2008_s3 + $0x38] sm:$0xff]  }
  0x38   :  { %689 = vperm.xlu0 %1376, %v681_v21   ;;  %v1384_v21 = vld [vmem:[%s2008_s3 + $0x30] sm:$0xff]  }
  0x3b   :  { %205 = vperm.xlu1 %1377, %v155_v23   ;;  %v1520_v23 = vmov 0.0  }
  0x3f   :  { %215 = vperm.xlu1 %1377, %v157_v24  }
  0x43   :  { %225 = vperm.xlu1 %1377, %v159_v25  }
  0x47   :  { %235 = vperm.xlu1 %1377, %v161_v26  }
  0x4b   :  { %684 = vperm.xlu1 %1377, %v680_v27  }
  0x8f   :  { %v62_v28 = vpop.xlane.xlu1 %61  ;;  %v58_v29 = vpop.xlane.xlu0 %57 }
  0x90   :  { %v77_v32 = vmul.f32 0.03125, %v58_v29  ;;  %v79_v34 = vmul.f32 0.03125, %v62_v28 }
  0x92   :  { %v85_v38 = vmul.f32 %v77_v32, %v77_v32  ;;  %v87_v44 = vmul.f32 %v79_v34, %v79_v34  ;;  %v93_v58 = vsub.f32 %v1603_v1, %v77_v32 }
  0x93   :  { %v64_v30 = vpop.xlane.xlu1 %63  ;;  %v60_v31 = vpop.xlane.xlu0 %59 }
  0x94   :  { %v78_v33 = vmul.f32 0.03125, %v60_v31  ;;  %v80_v35 = vmul.f32 0.03125, %v64_v30 }
  0x96   :  { %v86_v39 = vmul.f32 %v78_v33, %v78_v33  ;;  %v88_v45 = vmul.f32 %v80_v35, %v80_v35  ;;  %v94_v56 = vsub.f32 %v1615_v3, %v78_v33  ;;  %v96_v4 = vsub.f32 %v1608_v2, %v80_v35 }
  0x97   :  { %v72_v36 = vpop.xlane.xlu1 %71  ;;  %v70_v37 = vpop.xlane.xlu0 %69  ;;  %v95_v3 = vsub.f32 %v1598_v0, %v79_v34  ;;  %v1380_v0 = vld [vmem:[%s2008_s3 + $0x10] sm:$0xff]  }
  0x98   :  { %v82_v40 = vmul.f32 0.03125, %v72_v36  ;;  %v81_v41 = vmul.f32 0.03125, %v70_v37 }
  0x9a   :  { %v90_v42 = vsub.f32 %v82_v40, %v86_v39  ;;  %v89_v43 = vsub.f32 %v81_v41, %v85_v38 }
  0x9b   :  { %v76_v46 = vpop.xlane.xlu1 %75  ;;  %v74_v47 = vpop.xlane.xlu0 %73 }
  0x9c   :  { %v98_v48 = vadd.f32 1e-05, %v90_v42  ;;  %v97_v49 = vadd.f32 1e-05, %v89_v43  ;;  %v84_v50 = vmul.f32 0.03125, %v76_v46  ;;  %v83_v51 = vmul.f32 0.03125, %v74_v47 }
  0x9e   :  { %1403 = vrsqrt.f32 %v98_v48  ;;  %v92_v52 = vsub.f32 %v84_v50, %v88_v45  ;;  %v91_v53 = vsub.f32 %v83_v51, %v87_v44 }
  0x9f   :  { %1405 = vrsqrt.f32 %v97_v49  ;;  %v171_v24 = vpop.permute.xlu1 %170 }
  0xa0   :  { %v100_v54 = vadd.f32 1e-05, %v92_v52  ;;  %v99_v55 = vadd.f32 1e-05, %v91_v53 }
  0xa2   :  { %1407 = vrsqrt.f32 %v100_v54 }
  0xa3   :  { %1409 = vrsqrt.f32 %v99_v55  ;;  %v176_v25 = vpop.permute.xlu1 %175  ;;  %v166_v31 = vpop.permute.xlu0 %165 }
  0xa7   :  { %v181_v26 = vpop.permute.xlu1 %180 }
  0xa8   :  { %v1404_v57 = vpop.eup %1403 }
  0xa9   :  { %v1406_v60 = vpop.eup %1405  ;;  %v106_v61 = vmul.f32 %v1404_v57, %v94_v56 }
  0xaa   :  { %v105_v63 = vmul.f32 %v1406_v60, %v93_v58 }
  0xab   :  { %v116_v5 = vmul.f32 %v1151_v59, %v106_v61  ;;  %v186_v27 = vpop.permute.xlu1 %185 }
  0xac   :  { %v1408_v6 = vpop.eup %1407  ;;  %v115_v7 = vmul.f32 %v1151_v59, %v105_v63 }
  0xad   :  { %v1410_v8 = vpop.eup %1409  ;;  %v126_v1 = vadd.f32 %v1152_v62, %v116_v5  ;;  %v108_v9 = vmul.f32 %v1408_v6, %v96_v4 }
  0xae   :  { %v125_v10 = vadd.f32 %v1152_v62, %v115_v7  ;;  %v107_v11 = vmul.f32 %v1410_v8, %v95_v3 }
  0xaf   :  { %v118_v12 = vmul.f32 %v1151_v59, %v108_v9  ;;  %v1735_v28 = vpop.permute.xlu1 %190 }
  0xb0   :  { %v145_v13 = vpack.c.bf16 %v126_v1, %v125_v10  ;;  %v117_v14 = vmul.f32 %v1151_v59, %v107_v11 }
  0xb1   :  { %v128_v15 = vadd.f32 %v1152_v62, %v118_v12 }
  0xb2   :  { %1254 = vmatprep.subr.bf16.mxu0 %v145_v13  ;;  %v127_v2 = vadd.f32 %v1152_v62, %v117_v14 }
  0xb3   :  { %1255 = vmatpush3.bf16.msra.mxu0 %v145_v13  ;;  %v196_v29 = vpop.permute.xlu1 %195 }
  0xb4   :  { %v146_v17 = vpack.c.bf16 %v128_v15, %v127_v2  ;;  %1290 = vmatprep.subr.bf16.mxu0 %v1520_v23 }
  0xb6   :  { %1257 = vmatmul.mubr.msk.bf16.vlgmr.msra.gmra.mrb[0].mxu0 %vm283_vm0, %v1379_v16  ;;  %1272 = vmatprep.subr.bf16.mxu1 %v146_v17 }
  0xb7   :  { %1273 = vmatpush3.bf16.msra.mxu1 %v146_v17  ;;  %1260 = vmatprep.mubr.msk.bf16.mxu0 %vm283_vm0, %v1380_v0  ;;  %v201_v45 = vpop.permute.xlu1 %200 }
  0xb8   :  { %1310 = vmatprep.subr.bf16.mxu1 %v1520_v23 }
  0xba   :  { %1275 = vmatmul.mubr.msk.bf16.vlgmr.msra.gmra.mrb[0].mxu1 %vm283_vm0, %v1379_v16 }
  0xbb   :  { %1278 = vmatprep.mubr.msk.bf16.mxu1 %vm283_vm0, %v1380_v0  ;;  %v1741_v3 = vpop.permute.xlu1 %205 }
  0xbe   :  { %1261 = vmatmul.mubr.msk.bf16.gmra.mrb[4].mxu0 %vm283_vm0, %v1381_v18 }
  0xbf   :  { %1264 = vmatprep.mubr.msk.bf16.mxu0 %vm283_vm0, %v1382_v19 }
  0xc2   :  { %1279 = vmatmul.mubr.msk.bf16.gmra.mrb[4].mxu1 %vm283_vm0, %v1381_v18 }
  0xc3   :  { %1282 = vmatprep.mubr.msk.bf16.mxu1 %vm283_vm0, %v1382_v19 }
  0xc6   :  { %1265 = vmatmul.mubr.msk.bf16.gmra.mrb[8].mxu0 %vm283_vm0, %v1383_v20 }
  0xc7   :  { %1268 = vmatprep.mubr.msk.bf16.mxu0 %vm283_vm0, %v1384_v21 }
  0xca   :  { %1283 = vmatmul.mubr.msk.bf16.gmra.mrb[8].mxu1 %vm283_vm0, %v1383_v20 }
  0xcb   :  { %1286 = vmatprep.mubr.msk.bf16.mxu1 %vm283_vm0, %v1384_v21 }
  0xce   :  { %1269 = vmatmul.mubr.msk.bf16.gmra.mrb[12].mxu0 %vm283_vm0, %v1385_v22 }
  0xcf   :  { %1306 = vmatprep.mubr.msk.bf16.mxu0 %vm1521_vm1, %v1520_v23 }
  0xd2   :  { %1287 = vmatmul.mubr.msk.bf16.gmra.mrb[12].mxu1 %vm283_vm0, %v1385_v22 }
  0xd3   :  { %1326 = vmatprep.mubr.msk.bf16.mxu1 %vm1521_vm1, %v1520_v23 }
 0x189   :  { %v1258_v30 = vpop.f32.mrb[0].mxu0 }
 0x18a   :  { %v351_v32 = vadd.f32 %v1258_v30, %v176_v25  ;;  %v342_v33 = vpop.f32.mrb[1].mxu0  ;;  %v1753_v30 = vpop.permute.xlu0 %210 }
 0x18b   :  { %v343_v34 = vadd.f32 %v342_v33, %v166_v31  ;;  %v1259_v35 = vpop.f32.mrb[2].mxu0 }
 0x18c   :  { %v536_v36 = vmul.f32 0.70710677, %v351_v32  ;;  %v354_v37 = vadd.f32 %v1259_v35, %v181_v26  ;;  %v345_v38 = vpop.f32.mrb[3].mxu0  ;;  %v1737_v55 = vmul.f32 0.5, %v351_v32  ;;  %v216_v35 = vpop.permute.xlu1 %215 }
 0x18d   :  { %v534_v39 = vmul.f32 0.70710677, %v343_v34  ;;  %v346_v40 = vadd.f32 %v345_v38, %v171_v24  ;;  %v1276_v41 = vpop.f32.mrb[0].mxu1  ;;  %v1739_v59 = vmul.f32 0.5, %v343_v34 }
 0x18e   :  { %1411 = verf.f32 %v536_v36  ;;  %v537_v42 = vmul.f32 0.70710677, %v354_v37  ;;  %v448_v43 = vadd.f32 %v1276_v41, %v176_v25  ;;  %v439_v44 = vpop.f32.mrb[1].mxu1  ;;  %v505_v63 = vmul.f32 0.5, %v354_v37 }
 0x18f   :  { %1413 = verf.f32 %v534_v39  ;;  %v535_v46 = vmul.f32 0.70710677, %v346_v40  ;;  %v440_v47 = vadd.f32 %v439_v44, %v166_v31  ;;  %v1277_v48 = vpop.f32.mrb[2].mxu1  ;;  %v503_v7 = vmul.f32 0.5, %v346_v40 }
 0x190   :  { %1415 = verf.f32 %v537_v42  ;;  %v552_v49 = vmul.f32 0.70710677, %v448_v43  ;;  %v451_v50 = vadd.f32 %v1277_v48, %v181_v26  ;;  %v442_v51 = vpop.f32.mrb[3].mxu1  ;;  %v1744_v10 = vmul.f32 0.5, %v448_v43 }
 0x191   :  { %1417 = verf.f32 %v535_v46  ;;  %v550_v52 = vmul.f32 0.70710677, %v440_v47  ;;  %v443_v53 = vadd.f32 %v442_v51, %v171_v24  ;;  %v1262_v54 = vpop.f32.mrb[4].mxu0  ;;  %v1746_v14 = vmul.f32 0.5, %v440_v47 }
 0x192   :  { %1419 = verf.f32 %v552_v49  ;;  %v553_v56 = vmul.f32 0.70710677, %v451_v50  ;;  %v367_v57 = vadd.f32 %v1262_v54, %v196_v29  ;;  %v358_v58 = vpop.f32.mrb[5].mxu0  ;;  %v521_v17 = vmul.f32 0.5, %v451_v50 }
 0x193   :  { %1421 = verf.f32 %v550_v52  ;;  %v551_v60 = vmul.f32 0.70710677, %v443_v53  ;;  %v359_v61 = vadd.f32 %v358_v58, %v186_v27  ;;  %v1263_v62 = vpop.f32.mrb[6].mxu0  ;;  %v519_v24 = vmul.f32 0.5, %v443_v53 }
 0x194   :  { %1423 = verf.f32 %v553_v56  ;;  %v540_v4 = vmul.f32 0.70710677, %v367_v57  ;;  %v370_v5 = vadd.f32 %v1263_v62, %v201_v45  ;;  %v361_v6 = vpop.f32.mrb[7].mxu0  ;;  %v1755_v31 = vmul.f32 0.5, %v367_v57 }
 0x195   :  { %1425 = verf.f32 %v551_v60  ;;  %v538_v8 = vmul.f32 0.70710677, %v359_v61  ;;  %v362_v1 = vadd.f32 %v361_v6, %v1735_v28  ;;  %v1280_v9 = vpop.f32.mrb[4].mxu1  ;;  %v1758_v37 = vmul.f32 0.5, %v359_v61 }
 0x196   :  { %1427 = verf.f32 %v540_v4  ;;  %v541_v11 = vmul.f32 0.70710677, %v370_v5  ;;  %v464_v12 = vadd.f32 %v1280_v9, %v196_v29  ;;  %v455_v13 = vpop.f32.mrb[5].mxu1  ;;  %v509_v42 = vmul.f32 0.5, %v370_v5 }
 0x197   :  { %1429 = verf.f32 %v538_v8  ;;  %v539_v15 = vmul.f32 0.70710677, %v362_v1  ;;  %v1748_v16 = vadd.f32 %v455_v13, %v186_v27  ;;  %v1281_v2 = vpop.f32.mrb[6].mxu1  ;;  %v507_v54 = vmul.f32 0.5, %v362_v1 }
 0x198   :  { %v1412_v0 = vpop.eup %1411  ;;  %1431 = verf.f32 %v541_v11  ;;  %v556_v18 = vmul.f32 0.70710677, %v464_v12  ;;  %v1750_v19 = vadd.f32 %v1281_v2, %v201_v45  ;;  %v458_v20 = vpop.f32.mrb[7].mxu1  ;;  %v524_v6 = vmul.f32 0.5, %v464_v12 }
 0x199   :  { %v1414_v21 = vpop.eup %1413  ;;  %v600_v22 = vadd.f32 1.0, %v1412_v0  ;;  %1433 = verf.f32 %v539_v15  ;;  %v554_v25 = vmul.f32 0.70710677, %v1748_v16  ;;  %v1266_v26 = vpop.f32.mrb[8].mxu0  ;;  %v1761_v38 = vadd.f32 %v458_v20, %v1735_v28 }
 0x19a   :  { %v1416_v29 = vpop.eup %1415  ;;  %v598_v27 = vadd.f32 1.0, %v1414_v21  ;;  %1435 = verf.f32 %v556_v18  ;;  %v557_v32 = vmul.f32 0.70710677, %v1750_v19  ;;  %v374_v33 = vpop.f32.mrb[9].mxu0  ;;  %v1763_v43 = vadd.f32 %v1266_v26, %v216_v35 }
 0x19b   :  { %v1418_v34 = vpop.eup %1417  ;;  %v601_v36 = vadd.f32 1.0, %v1416_v29  ;;  %1437 = verf.f32 %v554_v25  ;;  %v1267_v39 = vpop.f32.mrb[10].mxu0  ;;  %v1766_v46 = vmul.f32 %v600_v22, %v1737_v55  ;;  %v555_v49 = vmul.f32 0.70710677, %v1761_v38 }
 0x19c   :  { %v1420_v40 = vpop.eup %1419  ;;  %v599_v41 = vadd.f32 1.0, %v1418_v34  ;;  %1439 = verf.f32 %v557_v32  ;;  %v377_v44 = vpop.f32.mrb[11].mxu0  ;;  %v630_v28 = vmul.f32 %v598_v27, %v1739_v59  ;;  %v544_v55 = vmul.f32 0.70710677, %v1763_v43 }
 0x19d   :  { %v1422_v45 = vpop.eup %1421  ;;  %v633_v47 = vmul.f32 %v601_v36, %v505_v63  ;;  %v616_v48 = vadd.f32 1.0, %v1420_v40  ;;  %v1284_v50 = vpop.f32.mrb[8].mxu1  ;;  %1441 = verf.f32 %v555_v49  ;;  %v1786_v11 = vadd.f32 %v374_v33, %v1741_v3 }
 0x19e   :  { %v1424_v51 = vpop.eup %1423  ;;  %v631_v52 = vmul.f32 %v599_v41, %v503_v7  ;;  %v614_v53 = vadd.f32 1.0, %v1422_v45  ;;  %v1770_v56 = vpop.f32.mrb[9].mxu1  ;;  %v522_v12 = vmul.f32 0.5, %v1748_v16  ;;  %1443 = verf.f32 %v544_v55 }
 0x19f   :  { %v1426_v57 = vpop.eup %1425  ;;  %v665_v58 = vpack.c.bf16 %v633_v47, %v1766_v46  ;;  %v617_v60 = vadd.f32 1.0, %v1424_v51  ;;  %v1774_v61 = vpop.f32.mrb[10].mxu1  ;;  %v1779_v59 = vmul.f32 %v616_v48, %v1744_v10  ;;  %v1800_v26 = vadd.f32 %v377_v44, %v1753_v30 }
 0x1a0   :  { %v1428_v62 = vpop.eup %1427  ;;  %v1776_v63 = vpop.permute.xlu0 %220  ;;  %v664_v4 = vpack.c.bf16 %v631_v52, %v630_v28  ;;  %v615_v5 = vadd.f32 1.0, %v1426_v57  ;;  %v646_v0 = vmul.f32 %v614_v53, %v1746_v14  ;;  %v542_v27 = vmul.f32 0.70710677, %v1786_v11 }
 0x1a1   :  { %v1781_v7 = vpop.f32.mrb[11].mxu1  ;;  %v1430_v8 = vpop.eup %1429  ;;  %v1783_v1 = vmul.f32 %v617_v60, %v521_v17  ;;  %v604_v9 = vadd.f32 1.0, %v1428_v62  ;;  %v1789_v13 = vadd.f32 %v1267_v39, %v1776_v63  ;;  %v1806_v32 = vadd.f32 %v1284_v50, %v216_v35 }
 0x1a2   :  { %v1270_v15 = vpop.f32.mrb[12].mxu0  ;;  %v1432_v2 = vpop.eup %1431  ;;  %v647_v10 = vmul.f32 %v615_v5, %v519_v24  ;;  %v602_v18 = vadd.f32 1.0, %v1430_v8  ;;  %1291 = vmatpush3.bf16.msra.mxu0 %v664_v4  ;;  %v525_v48 = vmul.f32 0.5, %v1750_v19  ;;  %1445 = verf.f32 %v542_v27 }
 0x1a3   :  { %v1793_v20 = vpop.f32.mrb[13].mxu0  ;;  %v1434_v17 = vpop.eup %1433  ;;  %v673_v22 = vpack.c.bf16 %v1783_v1, %v1779_v59  ;;  %v605_v25 = vadd.f32 1.0, %v1432_v2  ;;  %1292 = vmatprep.subr.bf16.mxu0 %v1520_v23  ;;  %v636_v36 = vmul.f32 %v604_v9, %v1755_v31  ;;  %v545_v41 = vmul.f32 0.70710677, %v1789_v13 }
 0x1a4   :  { %v1795_v21 = vpop.permute.xlu1 %225  ;;  %v1802_v29 = vpop.f32.mrb[14].mxu0  ;;  %v672_v16 = vpack.c.bf16 %v647_v10, %v646_v0  ;;  %v603_v24 = vadd.f32 1.0, %v1434_v17  ;;  %v634_v46 = vmul.f32 %v602_v18, %v1758_v37  ;;  %v523_v51 = vmul.f32 0.5, %v1761_v38 }
 0x1a5   :  { %v1436_v14 = vpop.eup %1435  ;;  %v393_v33 = vpop.f32.mrb[15].mxu0  ;;  %v637_v39 = vmul.f32 %v605_v25, %v509_v42  ;;  %1447 = verf.f32 %v545_v41  ;;  %v543_v52 = vmul.f32 0.70710677, %v1800_v26  ;;  %v560_v38 = vmul.f32 0.70710677, %v1806_v32 }
 0x1a6   :  { %v1438_v34 = vpop.eup %1437  ;;  %v620_v40 = vadd.f32 1.0, %v1436_v14  ;;  %v1288_v44 = vpop.f32.mrb[12].mxu1  ;;  %v635_v47 = vmul.f32 %v603_v24, %v507_v54  ;;  %1293 = vmatpush3.bf16.msra.mxu0 %v665_v58  ;;  %1311 = vmatpush3.bf16.msra.mxu1 %v672_v16  ;;  %v1825_v60 = vadd.f32 %v1770_v56, %v1741_v3  ;;  %v1829_v55 = vadd.f32 %v1774_v61, %v1776_v63 }
 0x1a7   :  { %v1440_v45 = vpop.eup %1439  ;;  %v487_v49 = vpop.f32.mrb[13].mxu1  ;;  %v667_v35 = vpack.c.bf16 %v637_v39, %v636_v36  ;;  %1294 = vmatprep.subr.bf16.mxu0 %v1520_v23  ;;  %1312 = vmatprep.subr.bf16.mxu1 %v1520_v23  ;;  %v618_v19 = vadd.f32 1.0, %v1438_v34  ;;  %1449 = verf.f32 %v543_v52  ;;  %v1833_v4 = vadd.f32 %v1781_v7, %v1753_v30 }
 0x1a8   :  { %v621_v50 = vadd.f32 1.0, %v1440_v45  ;;  %v1813_v31 = vpop.f32.mrb[14].mxu1  ;;  %v1817_v42 = vpop.permute.xlu0 %230  ;;  %v666_v37 = vpack.c.bf16 %v635_v47, %v634_v46  ;;  %v652_v28 = vmul.f32 %v620_v40, %v524_v6  ;;  %1451 = verf.f32 %v560_v38 }
 0x1a9   :  { %v1820_v53 = vpop.f32.mrb[15].mxu1  ;;  %v1442_v54 = vpop.eup %1441  ;;  %v650_v3 = vmul.f32 %v618_v19, %v522_v12  ;;  %v558_v61 = vmul.f32 0.70710677, %v1825_v60  ;;  %v561_v63 = vmul.f32 0.70710677, %v1829_v55  ;;  %v1845_v9 = vadd.f32 %v1793_v20, %v1795_v21 }
 0x1aa   :  { %v236_v57 = vpop.permute.xlu1 %235  ;;  %v653_v58 = vmul.f32 %v621_v50, %v525_v48  ;;  %v619_v62 = vadd.f32 1.0, %v1442_v54  ;;  %1295 = vmatpush3.bf16.msra.mxu0 %v666_v37  ;;  %1313 = vmatpush3.bf16.msra.mxu1 %v673_v22  ;;  %v1444_v6 = vpop.eup %1443  ;;  %v559_v30 = vmul.f32 0.70710677, %v1833_v4  ;;  %v1851_v2 = vadd.f32 %v393_v33, %v1817_v42 }
 0x1ab   :  { %v1835_v59 = vadd.f32 %v1270_v15, %v236_v57  ;;  %1296 = vmatprep.subr.bf16.mxu0 %v1520_v23  ;;  %1314 = vmatprep.subr.bf16.mxu1 %v1520_v23  ;;  %1453 = verf.f32 %v558_v61  ;;  %v1853_v0 = vadd.f32 %v1288_v44, %v236_v57  ;;  %v608_v18 = vadd.f32 1.0, %v1444_v6 }
 0x1ac   :  { %v675_v5 = vpack.c.bf16 %v653_v58, %v652_v28  ;;  %v651_v56 = vmul.f32 %v619_v62, %v523_v51  ;;  %v241_v7 = vpop.permute.xlu0 %240  ;;  %1455 = verf.f32 %v561_v63  ;;  %v1446_v10 = vpop.eup %1445  ;;  %v546_v12 = vmul.f32 0.70710677, %v1845_v9 }
 0x1ad   :  { %v548_v1 = vmul.f32 0.70710677, %v1835_v59  ;;  %v1848_v15 = vadd.f32 %v1802_v29, %v241_v7  ;;  %1457 = verf.f32 %v559_v30  ;;  %v1858_v20 = vadd.f32 %v487_v49, %v1795_v21 }
 0x1ae   :  { %v674_v8 = vpack.c.bf16 %v651_v56, %v650_v3  ;;  %1297 = vmatpush3.bf16.msra.mxu0 %v667_v35  ;;  %v512_v22 = vmul.f32 0.5, %v1763_v43  ;;  %v510_v25 = vmul.f32 0.5, %v1786_v11  ;;  %v513_v14 = vmul.f32 0.5, %v1789_v13 }
 0x1af   :  { %1298 = vmatprep.subr.bf16.mxu0 %v1520_v23  ;;  %v1448_v17 = vpop.eup %1447  ;;  %1459 = verf.f32 %v548_v1  ;;  %v549_v29 = vmul.f32 0.70710677, %v1848_v15  ;;  %v547_v24 = vmul.f32 0.70710677, %v1851_v2  ;;  %v606_v27 = vadd.f32 1.0, %v1446_v10 }
 0x1b0   :  { %1315 = vmatpush3.bf16.msra.mxu1 %v674_v8  ;;  %v609_v16 = vadd.f32 1.0, %v1448_v17  ;;  %1461 = verf.f32 %v546_v12  ;;  %v511_v21 = vmul.f32 0.5, %v1800_v26  ;;  %v564_v33 = vmul.f32 0.70710677, %v1853_v0 }
 0x1b1   :  { %1316 = vmatprep.subr.bf16.mxu1 %v1520_v23  ;;  %1463 = verf.f32 %v549_v29  ;;  %v1450_v43 = vpop.eup %1449  ;;  %v640_v34 = vmul.f32 %v608_v18, %v512_v22  ;;  %v562_v36 = vmul.f32 0.70710677, %v1858_v20  ;;  %v499_v13 = vadd.f32 %v1813_v31, %v241_v7 }
 0x1b2   :  { %v641_v11 = vmul.f32 %v609_v16, %v513_v14  ;;  %1465 = verf.f32 %v547_v24  ;;  %v1452_v39 = vpop.eup %1451  ;;  %v607_v40 = vadd.f32 1.0, %v1450_v43  ;;  %v491_v41 = vadd.f32 %v1820_v53, %v1817_v42 }
 0x1b3   :  { %1467 = verf.f32 %v564_v33  ;;  %v638_v44 = vmul.f32 %v606_v27, %v510_v25  ;;  %v565_v46 = vmul.f32 0.70710677, %v499_v13  ;;  %v624_v48 = vadd.f32 1.0, %v1452_v39 }
 0x1b4   :  { %1317 = vmatpush3.bf16.msra.mxu1 %v675_v5  ;;  %v669_v26 = vpack.c.bf16 %v641_v11, %v640_v34  ;;  %1469 = verf.f32 %v562_v36  ;;  %v639_v45 = vmul.f32 %v607_v40, %v511_v21  ;;  %v563_v49 = vmul.f32 0.70710677, %v491_v41 }
 0x1b5   :  { %1318 = vmatprep.subr.bf16.mxu1 %v1520_v23  ;;  %v1454_v47 = vpop.eup %1453  ;;  %1471 = verf.f32 %v565_v46  ;;  %v528_v31 = vmul.f32 0.5, %v1806_v32  ;;  %v529_v28 = vmul.f32 0.5, %v1829_v55  ;;  %v526_v52 = vmul.f32 0.5, %v1825_v60 }
 0x1b6   :  { %v1456_v35 = vpop.eup %1455  ;;  %v668_v50 = vpack.c.bf16 %v639_v45, %v638_v44  ;;  %v622_v51 = vadd.f32 1.0, %v1454_v47  ;;  %1473 = verf.f32 %v563_v49  ;;  %v527_v53 = vmul.f32 0.5, %v1833_v4 }
 0x1b7   :  { %v1458_v37 = vpop.eup %1457  ;;  %v625_v42 = vadd.f32 1.0, %v1456_v35  ;;  %v656_v58 = vmul.f32 %v624_v48, %v528_v31  ;;  %v516_v63 = vmul.f32 0.5, %v1835_v59  ;;  %v517_v60 = vmul.f32 0.5, %v1848_v15  ;;  %v690_v35 = vpop.permute.xlu0 %689 }
 0x1b8   :  { %v623_v54 = vadd.f32 1.0, %v1458_v37  ;;  %1299 = vmatpush3.bf16.msra.mxu0 %v668_v50  ;;  %v654_v3 = vmul.f32 %v622_v51, %v526_v52  ;;  %v514_v7 = vmul.f32 0.5, %v1845_v9  ;;  %v515_v8 = vmul.f32 0.5, %v1851_v2  ;;  %v1491_v50 = vld [vmem:[%s2005_s0] sm:$0xff] }
 0x1b9   :  { %v1460_v19 = vpop.eup %1459  ;;  %v657_v38 = vmul.f32 %v625_v42, %v529_v28  ;;  %1300 = vmatprep.subr.bf16.mxu0 %v1520_v23  ;;  %v532_v2 = vmul.f32 0.5, %v1853_v0  ;;  %v533_v16 = vmul.f32 0.5, %v499_v13  ;;  %v530_v27 = vmul.f32 0.5, %v1858_v20  ;;  %v1386_v0 = vld [vmem:[%s2010_s5] sm:$0xff]  }
 0x1ba   :  { %v1462_v57 = vpop.eup %1461  ;;  %v612_v62 = vadd.f32 1.0, %v1460_v19  ;;  %v655_v32 = vmul.f32 %v623_v54, %v527_v53  ;;  %v531_v21 = vmul.f32 0.5, %v491_v41  ;;  %v50_v20 = vlaneseq  ;;  %v685_v41 = vpop.permute.xlu1 %684 }
 0x1bb   :  { %v1464_v5 = vpop.eup %1463  ;;  %v610_v56 = vadd.f32 1.0, %v1462_v57  ;;  %v677_v61 = vpack.c.bf16 %v657_v38, %v656_v58  ;;  %v1492_v57 = vld [vmem:[%s2005_s0 + $0x10] sm:$0xff] }
 0x1bc   :  { %v1466_v55 = vpop.eup %1465  ;;  %v613_v6 = vadd.f32 1.0, %v1464_v5  ;;  %v676_v30 = vpack.c.bf16 %v655_v32, %v654_v3  ;;  %1301 = vmatpush3.bf16.msra.mxu0 %v669_v26  ;;  %v644_v18 = vmul.f32 %v612_v62, %v516_v63  ;;  %v51_v13 = vand.u32 127, %v50_v20  ;;  %v1493_v62 = vld [vmem:[%s2005_s0 + $0x8] sm:$0xff]  ;;  %v1494_v3 = vld [vmem:[%s2005_s0 + $0x18] sm:$0xff] }
 0x1bd   :  { %v1468_v4 = vpop.eup %1467  ;;  %v611_v1 = vadd.f32 1.0, %v1466_v55  ;;  %1302 = vmatprep.subr.bf16.mxu0 %v1520_v23  ;;  %v642_v17 = vmul.f32 %v610_v56, %v514_v7  ;;  %v1391_v7 = vld [vmem:[%s2014_s9 + $0x20] sm:$0xff]  }
 0x1be   :  { %v1470_v10 = vpop.eup %1469  ;;  %v645_v12 = vmul.f32 %v613_v6, %v517_v60  ;;  %1319 = vmatpush3.bf16.msra.mxu1 %v676_v30  ;;  %v628_v25 = vadd.f32 1.0, %v1468_v4  ;;  %vm52_vm2 = vcmp.lt.s32.totalorder %v51_v13, 32  ;;  %v1387_v60 = vld [vmem:[%s2014_s9] sm:$0xff]   ;;  %v1388_v6 = vld [vmem:[%s2014_s9 + $0x8] sm:$0xff]   ;;  %v1389_v4 = vld [vmem:[%s2014_s9 + $0x10] sm:$0xff]  }
 0x1bf   :  { %v643_v22 = vmul.f32 %v611_v1, %v515_v8  ;;  %1320 = vmatprep.subr.bf16.mxu1 %v1520_v23  ;;  %v1472_v15 = vpop.eup %1471  ;;  %v626_v14 = vadd.f32 1.0, %v1470_v10  ;;  %v1150_v26 = vsel %vm52_vm2, 1.0, %v1520_v23  ;;  %v1390_v30 = vld [vmem:[%s2014_s9 + $0x18] sm:$0xff]   ;;  %v1392_v8 = vld [vmem:[%s2014_s9 + $0x28] sm:$0xff]   ;;  %v1393_v1 = vld [vmem:[%s2014_s9 + $0x30] sm:$0xff]  }
 0x1c0   :  { %v671_v59 = vpack.c.bf16 %v645_v12, %v644_v18  ;;  %v1474_v9 = vpop.eup %1473  ;;  %v629_v24 = vadd.f32 1.0, %v1472_v15  ;;  %v660_v43 = vmul.f32 %v628_v25, %v532_v2  ;;  %v1394_v10 = vld [vmem:[%s2014_s9 + $0x38] sm:$0xff]   ;;  %v1395_v18 = vld [vmem:[%s2016_s11] sm:$0xff]   ;;  %v1396_v12 = vld [vmem:[%s2016_s11 + $0x8] sm:$0xff]  }
 0x1c1   :  { %v670_v29 = vpack.c.bf16 %v643_v22, %v642_v17  ;;  %v627_v33 = vadd.f32 1.0, %v1474_v9  ;;  %v658_v11 = vmul.f32 %v626_v14, %v530_v27 }
 0x1c2   :  { %1321 = vmatpush3.bf16.msra.mxu1 %v677_v61  ;;  %v661_v34 = vmul.f32 %v629_v24, %v533_v16 }
 0x1c3   :  { %1303 = vmatpush3.bf16.msra.mxu0 %v670_v29  ;;  %1322 = vmatprep.subr.bf16.mxu1 %v1520_v23  ;;  %v659_v36 = vmul.f32 %v627_v33, %v531_v21 }
 0x1c4   :  { %1304 = vmatprep.subr.bf16.mxu0 %v1520_v23  ;;  %v679_v39 = vpack.c.bf16 %v661_v34, %v660_v43 }
 0x1c5   :  { %v678_v40 = vpack.c.bf16 %v659_v36, %v658_v11 }
 0x1c7   :  { %1305 = vmatpush3.bf16.msra.mxu0 %v671_v59  ;;  %1323 = vmatpush3.bf16.msra.mxu1 %v678_v40 }
 0x1c8   :  { %1324 = vmatprep.subr.bf16.mxu1 %v1520_v23  ;;  %1330 = vmatprep.subr.bf16.mxu0 %v1387_v60 }
 0x1ca   :  { %1307 = vmatmul.mubr.bf16.vlgmr.msra.gmra.mrb[16].mxu0 %v1386_v0 }
 0x1cb   :  { %1325 = vmatpush3.bf16.msra.mxu1 %v679_v39  ;;  %1331 = vmatpush3.bf16.msra.mxu0 %v1387_v60 }
 0x1cc   :  { %1332 = vmatprep.subr.bf16.mxu0 %v1388_v6  ;;  %1350 = vmatprep.subr.bf16.mxu1 %v1395_v18 }
 0x1ce   :  { %1327 = vmatmul.mubr.bf16.vlgmr.msra.gmra.mrb[16].mxu1 %v1386_v0 }
 0x1cf   :  { %1333 = vmatpush3.bf16.msra.mxu0 %v1388_v6  ;;  %1351 = vmatpush3.bf16.msra.mxu1 %v1395_v18  ;;  %v1180_v18 = vld [vmem:[%s2015_s10] ss:$0 sm:$0xff] }
 0x1d0   :  { %1334 = vmatprep.subr.bf16.mxu0 %v1389_v4  ;;  %1352 = vmatprep.subr.bf16.mxu1 %v1396_v12 }
 0x1d3   :  { %1335 = vmatpush3.bf16.msra.mxu0 %v1389_v4  ;;  %1353 = vmatpush3.bf16.msra.mxu1 %v1396_v12  ;;  %v1397_v4 = vld [vmem:[%s2016_s11 + $0x10] sm:$0xff]  }
 0x1d4   :  { %1336 = vmatprep.subr.bf16.mxu0 %v1390_v30  ;;  %1354 = vmatprep.subr.bf16.mxu1 %v1397_v4 }
 0x1d7   :  { %1337 = vmatpush3.bf16.msra.mxu0 %v1390_v30  ;;  %1355 = vmatpush3.bf16.msra.mxu1 %v1397_v4  ;;  %v1398_v30 = vld [vmem:[%s2016_s11 + $0x18] sm:$0xff]  }
 0x1d8   :  { %1338 = vmatprep.subr.bf16.mxu0 %v1391_v7  ;;  %1356 = vmatprep.subr.bf16.mxu1 %v1398_v30 }
 0x1db   :  { %1339 = vmatpush3.bf16.msra.mxu0 %v1391_v7  ;;  %1357 = vmatpush3.bf16.msra.mxu1 %v1398_v30  ;;  %v1399_v7 = vld [vmem:[%s2016_s11 + $0x20] sm:$0xff]  }
 0x1dc   :  { %1340 = vmatprep.subr.bf16.mxu0 %v1392_v8  ;;  %1358 = vmatprep.subr.bf16.mxu1 %v1399_v7 }
 0x1df   :  { %1341 = vmatpush3.bf16.msra.mxu0 %v1392_v8  ;;  %1359 = vmatpush3.bf16.msra.mxu1 %v1399_v7  ;;  %v1400_v8 = vld [vmem:[%s2016_s11 + $0x28] sm:$0xff]  }
 0x1e0   :  { %1342 = vmatprep.subr.bf16.mxu0 %v1393_v1  ;;  %1360 = vmatprep.subr.bf16.mxu1 %v1400_v8 }
 0x1e3   :  { %1343 = vmatpush3.bf16.msra.mxu0 %v1393_v1  ;;  %1361 = vmatpush3.bf16.msra.mxu1 %v1400_v8  ;;  %v1401_v1 = vld [vmem:[%s2016_s11 + $0x30] sm:$0xff]  }
 0x1e4   :  { %1344 = vmatprep.subr.bf16.mxu0 %v1394_v10  ;;  %1362 = vmatprep.subr.bf16.mxu1 %v1401_v1 }
 0x1e7   :  { %1345 = vmatpush3.bf16.msra.mxu0 %v1394_v10  ;;  %1363 = vmatpush3.bf16.msra.mxu1 %v1401_v1  ;;  %v1402_v10 = vld [vmem:[%s2016_s11 + $0x38] sm:$0xff]  }
 0x1e8   :  { %1364 = vmatprep.subr.bf16.mxu1 %v1402_v10 }
 0x1eb   :  { %1365 = vmatpush3.bf16.msra.mxu1 %v1402_v10 }
 0x29d   :  { %v732_v44 = vpop.f32.mrb[16].mxu0 }
 0x29e   :  { %v733_v45 = vadd.f32 %v732_v44, %v685_v41  ;;  %v1308_v46 = vpop.f32.mrb[17].mxu0 }
 0x29f   :  { %v735_v47 = vpop.f32.mrb[18].mxu0 }
 0x2a0   :  { %v780_v48 = vmul.f32 %v1150_v26, %v733_v45  ;;  %v1309_v49 = vpop.f32.mrb[19].mxu0  ;;  %v736_v37 = vadd.f32 %v735_v47, %v690_v35 }
 0x2a1   :  { %v773_v31 = vpop.f32.mrb[16].mxu1  ;;  %v1178_v49 = vld [vmem:[%s2012_s7] ss:$0 sm:$0xff] }
 0x2a2   :  { %v1896_v51 = vadd.f32 %v1491_v50, %v780_v48  ;;  %v774_v28 = vadd.f32 %v773_v31, %v685_v41  ;;  %v1328_v42 = vpop.f32.mrb[17].mxu1  ;;  %v781_v19 = vmul.f32 %v1150_v26, %v736_v37 }
 0x2a3   :  { %v776_v23 = vpop.f32.mrb[18].mxu1 }
 0x2a4   :  { %790 = vadd.xlane.f32.xlu1 %v1896_v51  ;;  %v782_v52 = vmul.f32 %v1150_v26, %v774_v28  ;;  %v777_v53 = vadd.f32 %v776_v23, %v690_v35  ;;  %v1329_v54 = vpop.f32.mrb[19].mxu1  ;;  %v1907_v5 = vadd.f32 %v1493_v62, %v781_v19  ;;  %v798_v55 = vmul.f32 %v1896_v51, %v1896_v51  ;;  %v1179_v19 = vld [vmem:[%s2013_s8] ss:$0 sm:$0xff] }
 0x2a6   :  { %v1902_v58 = vadd.f32 %v1492_v57, %v782_v52  ;;  %v783_v38 = vmul.f32 %v1150_v26, %v777_v53  ;;  %v799_v56 = vmul.f32 %v1907_v5, %v1907_v5 }
 0x2a8   :  { %v1912_v32 = vadd.f32 %v1494_v3, %v783_v38  ;;  %794 = vadd.xlane.f32.xlu0 %v1902_v58  ;;  %v800_v63 = vmul.f32 %v1902_v58, %v1902_v58 }
 0x2aa   :  { %796 = vadd.xlane.f32.xlu1 %v1912_v32  ;;  %v801_v61 = vmul.f32 %v1912_v32, %v1912_v32 }
 0x2ac   :  { %792 = vadd.xlane.f32.xlu0 %v1907_v5 }
 0x2ae   :  { %804 = vadd.xlane.f32.xlu1 %v799_v56 }
 0x2b0   :  { %802 = vadd.xlane.f32.xlu0 %v798_v55 }
 0x2b2   :  { %808 = vadd.xlane.f32.xlu1 %v801_v61 }
 0x2b4   :  { %806 = vadd.xlane.f32.xlu0 %v800_v63 }
 0x331   :  { %v791_v17 = vpop.xlane.xlu1 %790 }
 0x332   :  { %v810_v15 = vmul.f32 0.03125, %v791_v17 }
 0x334   :  { %v818_v21 = vmul.f32 %v810_v15, %v810_v15  ;;  %v826_v35 = vsub.f32 %v1896_v51, %v810_v15 }
 0x335   :  { %v795_v22 = vpop.xlane.xlu0 %794 }
 0x336   :  { %v812_v24 = vmul.f32 0.03125, %v795_v22 }
 0x337   :  { %v797_v59 = vpop.xlane.xlu1 %796 }
 0x338   :  { %v813_v9 = vmul.f32 0.03125, %v797_v59  ;;  %v820_v40 = vmul.f32 %v812_v24, %v812_v24  ;;  %v828_v52 = vsub.f32 %v1902_v58, %v812_v24 }
 0x339   :  { %v793_v25 = vpop.xlane.xlu0 %792 }
 0x33a   :  { %v811_v29 = vmul.f32 0.03125, %v793_v25  ;;  %v821_v11 = vmul.f32 %v813_v9, %v813_v9  ;;  %v829_v31 = vsub.f32 %v1912_v32, %v813_v9 }
 0x33b   :  { %v805_v14 = vpop.xlane.xlu1 %804 }
 0x33c   :  { %v819_v2 = vmul.f32 %v811_v29, %v811_v29  ;;  %v815_v16 = vmul.f32 0.03125, %v805_v14  ;;  %v827_v47 = vsub.f32 %v1907_v5, %v811_v29 }
 0x33d   :  { %v803_v27 = vpop.xlane.xlu0 %802 }
 0x33e   :  { %v823_v33 = vsub.f32 %v815_v16, %v819_v2  ;;  %v814_v43 = vmul.f32 0.03125, %v803_v27 }
 0x33f   :  { %v809_v34 = vpop.xlane.xlu1 %808 }
 0x340   :  { %v831_v36 = vadd.f32 1e-05, %v823_v33  ;;  %v822_v39 = vsub.f32 %v814_v43, %v818_v21  ;;  %v817_v0 = vmul.f32 0.03125, %v809_v34 }
 0x341   :  { %v807_v20 = vpop.xlane.xlu0 %806 }
 0x342   :  { %1475 = vrsqrt.f32 %v831_v36  ;;  %v830_v13 = vadd.f32 1e-05, %v822_v39  ;;  %v825_v41 = vsub.f32 %v817_v0, %v821_v11  ;;  %v816_v26 = vmul.f32 0.03125, %v807_v20 }
 0x344   :  { %1477 = vrsqrt.f32 %v830_v13  ;;  %v833_v44 = vadd.f32 1e-05, %v825_v41  ;;  %v824_v45 = vsub.f32 %v816_v26, %v820_v40 }
 0x346   :  { %1479 = vrsqrt.f32 %v833_v44  ;;  %v832_v46 = vadd.f32 1e-05, %v824_v45 }
 0x348   :  { %1481 = vrsqrt.f32 %v832_v46 }
 0x34c   :  { %v1476_v48 = vpop.eup %1475 }
 0x34d   :  { %v839_v50 = vmul.f32 %v1476_v48, %v827_v47  ;;  %v1189_v48 = vld [vmem:[%s2017_s12] ss:$0 sm:$0xff]  ;;  %s1495_s12 = scalar_lea.vmem %s1140_s15, 512 }
 0x34e   :  { %v1478_v37 = vpop.eup %1477  ;;  %p1496_p0 = scmp.ne.s32.totalorder %s1140_s15, %s1495_s12  ;;  %p1501_p2 = scmp.lt.s32.totalorder %s1495_s12, %s1495_s12 }
 0x34f   :  { %v838_v28 = vmul.f32 %v1478_v37, %v826_v35  ;;  %v849_v42 = vmul.f32 %v1178_v49, %v839_v50 }
 0x350   :  { %v1480_v23 = vpop.eup %1479  ;;  %p1502_p3 = por %p1501_p2, %p1500_p1 }
 0x351   :  { %v848_v53 = vmul.f32 %v1178_v49, %v838_v28  ;;  %v841_v54 = vmul.f32 %v1480_v23, %v829_v31  ;;  %v859_v62 = vadd.f32 %v1179_v19, %v849_v42 }
 0x352   :  { %v1482_v57 = vpop.eup %1481  ;;  %p1503_p4 = pnand %p1502_p3, %p1496_p0 }
 0x353   :  { %v858_v38 = vadd.f32 %v1179_v19, %v848_v53  ;;  %v840_v3 = vmul.f32 %v1482_v57, %v828_v52  ;;  %v851_v56 = vmul.f32 %v1178_v49, %v841_v54 }
 0x355   :  { %v862_v55 = vpack.c.bf16 %v859_v62, %v858_v38  ;;  %v850_v61 = vmul.f32 %v1178_v49, %v840_v3  ;;  %v861_v60 = vadd.f32 %v1179_v19, %v851_v56 }
 0x357   :  { %1346 = vmatprep.mubr.bf16.mxu0 %v862_v55  ;;  %v860_v63 = vadd.f32 %v1179_v19, %v850_v61 }
 0x359   :  { %v863_v6 = vpack.c.bf16 %v861_v60, %v860_v63 }
 0x35b   :  { %1347 = vmatmul.mubr.bf16.vlgmr.msra.gmra.mrb[20].mxu0 %v863_v6 }
 0x42e   :  { %v1348_v12 = vpop.f32.mrb[20].mxu0 }
 0x42f   :  { %v978_v17 = vadd.f32 %v1348_v12, %v1180_v18  ;;  %v969_v22 = vpop.f32.mrb[21].mxu0 }
 0x430   :  { %v970_v59 = vadd.f32 %v1180_v18, %v969_v22  ;;  %v1349_v25 = vpop.f32.mrb[22].mxu0 }
 0x431   :  { %v990_v15 = vmul.f32 0.70710677, %v978_v17  ;;  %v981_v29 = vadd.f32 %v1349_v25, %v1180_v18  ;;  %v972_v14 = vpop.f32.mrb[23].mxu0  ;;  %v986_v36 = vmul.f32 0.5, %v978_v17 }
 0x432   :  { %v988_v9 = vmul.f32 0.70710677, %v970_v59  ;;  %v973_v2 = vadd.f32 %v1180_v18, %v972_v14  ;;  %v984_v40 = vmul.f32 0.5, %v970_v59 }
 0x433   :  { %1483 = verf.f32 %v990_v15  ;;  %v991_v16 = vmul.f32 0.70710677, %v981_v29  ;;  %v987_v39 = vmul.f32 0.5, %v981_v29 }
 0x434   :  { %1485 = verf.f32 %v988_v9  ;;  %v989_v24 = vmul.f32 0.70710677, %v973_v2  ;;  %v985_v20 = vmul.f32 0.5, %v973_v2 }
 0x435   :  { %1487 = verf.f32 %v991_v16 }
 0x436   :  { %1489 = verf.f32 %v989_v24 }
 0x43d   :  { %v1484_v27 = vpop.eup %1483 }
 0x43e   :  { %v1486_v21 = vpop.eup %1485  ;;  %v998_v33 = vadd.f32 1.0, %v1484_v27 }
 0x43f   :  { %v1488_v43 = vpop.eup %1487  ;;  %v996_v34 = vadd.f32 1.0, %v1486_v21 }
 0x440   :  { %v1490_v11 = vpop.eup %1489  ;;  %v999_v0 = vadd.f32 1.0, %v1488_v43  ;;  %v1002_v41 = vmul.f32 %v998_v33, %v986_v36 }
 0x441   :  { %v997_v13 = vadd.f32 1.0, %v1490_v11  ;;  %v1000_v44 = vmul.f32 %v996_v34, %v984_v40 }
 0x442   :  { %v1003_v26 = vmul.f32 %v999_v0, %v987_v39 }
 0x443   :  { %v1001_v45 = vmul.f32 %v997_v13, %v985_v20 }
 0x444   :  { %v1005_v46 = vpack.c.bf16 %v1003_v26, %v1002_v41 }
 0x445   :  { %v1004_v47 = vpack.c.bf16 %v1001_v45, %v1000_v44 }
 0x447   :  { %1366 = vmatprep.mubr.bf16.mxu1 %v1004_v47 }
 0x448   :  { %1367 = vmatmul.mubr.bf16.vlgmr.msra.gmra.mrb[20].mxu1 %v1005_v46 }
 0x51b   :  { %v1368_v49 = vpop.f32.mrb[20].mxu1 }
 0x51c   :  { %v1120_v35 = vadd.f32 %v1368_v49, %v1189_v48  ;;  %v1111_v50 = vpop.f32.mrb[21].mxu1 }
 0x51d   :  { %v1112_v37 = vadd.f32 %v1189_v48, %v1111_v50  ;;  %v1369_v31 = vpop.f32.mrb[22].mxu1 }
 0x51e   :  { %v1128_v28 = vadd.f32 %v1120_v35, %v1902_v58  ;;  %v1123_v42 = vadd.f32 %v1369_v31, %v1189_v48  ;;  %v1114_v23 = vpop.f32.mrb[23].mxu1 }
 0x51f   :  { %v1126_v19 = vadd.f32 %v1112_v37, %v1896_v51  ;;  %v1115_v52 = vadd.f32 %v1189_v48, %v1114_v23 }
 0x520   :  { %1132 = vst [vmem:[#allocation2 + $0x10] sm:$0xff] %v1128_v28  ;;  %v1129_v53 = vadd.f32 %v1123_v42, %v1912_v32 }
 0x521   :  { %1130 = vst [vmem:[#allocation2] sm:$0xff] %v1126_v19  ;;  %v1127_v54 = vadd.f32 %v1115_v52, %v1907_v5 }
 0x522   :  { %1133 = vst [vmem:[#allocation2 + $0x18] sm:$0xff] %v1129_v53 }
 0x523   :  { %1131 = vst [vmem:[#allocation2 + $0x8] sm:$0xff] %v1127_v54 }
 0x524   :  { %1506 = shalt.err (!%p1503_p4)
}
 0x525   :  { %s1507_s17 = scalar_lea.hbm %s2018_s13, 512 }
 0x526   :  { %p1508_p5 = scmp.ne.s32.totalorder %s2018_s13, %s1507_s17  ;;  %p1511_p6 = scmp.lt.u32.totalorder %s1507_s17, %s2018_s13 }
 0x528   :  { %p1513_p7 = pnand %p1511_p6, %p1508_p5 }
 0x52a   :  { %1516 = shalt.err (!%p1513_p7)
}
 0x52b   :  { %s1523_s9 = smov 128   ;;  %s1524_s6 = smov 8  }
 0x52c   :  { %1145 = dma.vmem_to_hbm [thread:$0]  %s1140_s15, 512, %s2018_s13, [#allocation3], %s1523_s9, %s1523_s9, %s1524_s6  }
 0x52d   :  { %1517 = dma.done.wait [#allocation3], 512  }
 0x52e   :  { %1518 = vsyncadd [#allocation3], 4294966784 }
 0x52f   :  { %1149 = vsyncpa [#allocation3], 1 }

</bundles_post_ra>
